<compile_context>
chip_gen: v7x
topology: tpu7x:2x2x1
jax: 0.10.0
libtpu: 0.0.40
codegen_flags: <defaults>
</compile_context>

<pallas_src>
import math

import jax
import jax.numpy as jnp
from jax.experimental import pallas as pl
from jax.experimental.pallas import tpu as pltpu


def _round_up(x: int, m: int) -> int:
    return ((x + m - 1) // m) * m


def _make_attention_kernel(num_heads: int):
    def kernel(q_ref, k_ref, v_ref,
               wq_ref, bq_ref, wk_ref, bk_ref, wv_ref, bv_ref,
               wo_ref, bo_ref, out_ref):
        D = wq_ref.shape[1]
        dh = D // num_heads
        rows = q_ref.shape[0]
        e_out = wo_ref.shape[1]
        mxu_dtype = q_ref.dtype       # bf16 in the production path, f32 here

        # Input projections: one whole-block MXU matmul each, f32 accumulation.
        # NOTE: the 1/sqrt(dh) score scale is already folded into wq/bq by the
        # wrapper -- do NOT apply it again here.
        qp = jnp.dot(q_ref[...], wq_ref[...],
                     preferred_element_type=jnp.float32) + bq_ref[...]
        kp = jnp.dot(k_ref[...], wk_ref[...],
                     preferred_element_type=jnp.float32) + bk_ref[...]
        vp = jnp.dot(v_ref[...], wv_ref[...],
                     preferred_element_type=jnp.float32) + bv_ref[...]

        out_acc = jnp.zeros((rows, e_out), jnp.float32)

        # Static per-head loop with the output projection folded per head and
        # accumulated in registers: no VMEM scratch roundtrip, no lane-dim
        # concatenate, no masked partial stores (the vst slot is the scarcest
        # VLIW resource, esp. on v5e).
        # TODO(synk): at long sequence lengths switch to a flash-style online
        # softmax over Nk tiles (plus an Nq grid axis) instead of materializing
        # the full (Nq, Nk) score tile per head -- gating change for v7x's
        # 64 MiB VMEM.
        for h in range(num_heads):
            lo = h * dh
            qh = qp[:, lo:lo + dh]          # (Nq, dh)
            kh = kp[:, lo:lo + dh]          # (Nk, dh)
            vh = vp[:, lo:lo + dh]          # (Nk, dh)

            # Contract the trailing head dim directly (q @ k^T without an
            # explicit XLU transpose); f32 accumulation on the MXU.
            s = jax.lax.dot_general(
                qh.astype(mxu_dtype), kh.astype(mxu_dtype),
                (((1,), (1,)), ((), ())),
                preferred_element_type=jnp.float32)           # (Nq, Nk)

            # Numerically stable softmax; max/exp/sum stay in f32 (VPU/EUP).
            s = s - jnp.max(s, axis=-1, keepdims=True)
            p = jnp.exp(s)
            l = jnp.sum(p, axis=-1, keepdims=True)
            inv = pl.reciprocal(l, approx=True)               # EUP slot
            inv = inv * (2.0 - l * inv)                       # Newton: ~exact f32
            p = p * inv

            oh = jnp.dot(p.astype(mxu_dtype), vh.astype(mxu_dtype),
                         preferred_element_type=jnp.float32)  # (Nq, dh)

            # Fold this head's slice of the output projection and accumulate.
            out_acc = out_acc + jnp.dot(
                oh.astype(mxu_dtype), wo_ref[lo:lo + dh, :],
                preferred_element_type=jnp.float32)

        out_ref[...] = (out_acc + bo_ref[...]).astype(out_ref.dtype)

    return kernel


def attention_pallas(q, k, v, params, num_heads, *, compute_dtype=None):
    """q: (B, Nq, E); k, v: (B, Nk, E). Returns (B, Nq, E).

    compute_dtype: optional dtype for MXU operands (e.g. jnp.bfloat16 at
    production sizes). Softmax math and accumulation stay float32.
    """
    B, Nq, E = q.shape
    Bk, Nk, Ek = k.shape
    assert Bk == B and Ek == E and v.shape == k.shape
    D = params["wq"].shape[1]  # internal_dim
    assert D % num_heads == 0, "num_heads must divide internal_dim"
    dh = D // num_heads

    out_dtype = q.dtype
    if compute_dtype is None:
        compute_dtype = q.dtype

    # Sublane tile: 8 rows for 4-byte dtypes, 16 for bf16.
    row_mult = 8 if jnp.dtype(compute_dtype).itemsize >= 4 else 16
    # Query rows may be zero-padded (each query's softmax is independent and
    # padded rows are sliced off). Key rows cannot be padded without masking.
    Nq_pad = _round_up(Nq, row_mult)
    assert Nk % row_mult == 0, "Nk must be a multiple of the sublane tile"
    # TODO(synk): mask padded keys (flash-style) to support arbitrary Nk.

    # Lane-dense embedding width (>=128) so all loads/stores are unmasked.
    E_pad = _round_up(E, 128)

    # Fold the 1/sqrt(dh) score scale into the q projection once at trace time
    # (constants). Mathematically identical to scaling the scores; the kernel
    # must NOT apply the scale again.
    scale = 1.0 / math.sqrt(dh)
    wq_s = params["wq"] * scale
    bq_s = params["bq"] * scale

    def pad_tokens(x, n_pad):
        # (B, N, E) -> (B*N_pad, E_pad): pad + flatten in the wrapper so the
        # kernel sees clean 2-D lane-dense tiles (no in-kernel reshape).
        x = jnp.pad(x, ((0, 0), (0, n_pad - x.shape[1]), (0, E_pad - E)))
        return x.reshape(B * n_pad, E_pad).astype(compute_dtype)

    q2 = pad_tokens(q, Nq_pad)
    k2 = pad_tokens(k, Nk)
    v2 = pad_tokens(v, Nk)

    def pad_w_in(w):  # (E, D) -> (E_pad, D); zero rows keep the matmul exact
        return jnp.pad(w, ((0, E_pad - E), (0, 0))).astype(compute_dtype)

    wq_p = pad_w_in(wq_s)
    wk_p = pad_w_in(params["wk"])
    wv_p = pad_w_in(params["wv"])
    wo_p = jnp.pad(params["wo"], ((0, 0), (0, E_pad - E))).astype(compute_dtype)
    # Biases stay f32 (added to the f32 accumulators).
    bq_p = bq_s.astype(jnp.float32)
    bk_p = params["bk"].astype(jnp.float32)
    bv_p = params["bv"].astype(jnp.float32)
    bo_p = jnp.pad(params["bo"], ((0, 0), (0, E_pad - E))).astype(jnp.float32)

    kernel = _make_attention_kernel(num_heads)

    # One batch element per grid step: for B >= 2 this gives a >=2-step
    # "parallel" axis (both v7x TensorCores get work) and lets BlockSpec
    # double-buffering overlap DMA with compute on all generations.
    grid = (B,)

    tok_q = pl.BlockSpec((Nq_pad, E_pad), lambda b: (b, 0))
    tok_k = pl.BlockSpec((Nk, E_pad), lambda b: (b, 0))
    w_in = pl.BlockSpec((E_pad, D), lambda b: (0, 0))
    b_in = pl.BlockSpec((1, D), lambda b: (0, 0))
    w_out = pl.BlockSpec((D, E_pad), lambda b: (0, 0))
    b_out = pl.BlockSpec((1, E_pad), lambda b: (0, 0))
    # TODO(synk): at production E/D, single-buffer the grid-invariant weights
    # (one-time DMA into persistent scratch) to reclaim double-buffered VMEM,
    # which matters most under v7x's 64 MiB budget.

    out2 = pl.pallas_call(
        kernel,
        out_shape=jax.ShapeDtypeStruct((B * Nq_pad, E_pad), out_dtype),
        grid_spec=pltpu.PrefetchScalarGridSpec(
            num_scalar_prefetch=0,
            grid=grid,
            in_specs=[
                tok_q, tok_k, tok_k,
                w_in, b_in,    # q_proj (scale pre-folded)
                w_in, b_in,    # k_proj
                w_in, b_in,    # v_proj
                w_out, b_out,  # out_proj (lane-padded)
            ],
            out_specs=pl.BlockSpec((Nq_pad, E_pad), lambda b: (b, 0)),
        ),
        compiler_params=pltpu.CompilerParams(
            dimension_semantics=("parallel",),
            # Re-derive when scaling tiles: default scoped VMEM (16/32/32 MiB
            # on v5e/v6e/v7x) is far below physical.
            vmem_limit_bytes=32 * 1024 * 1024,
        ),
    )(q2, k2, v2, wq_p, bq_p, wk_p, bk_p, wv_p, bv_p, wo_p, bo_p)

    # Un-flatten and strip padding in the wrapper (layout plumbing, not compute).
    return out2.reshape(B, Nq_pad, E_pad)[:, :Nq, :E]


def attention_reference(q, k, v, params, num_heads):
    """Pure-JAX reference mirroring the PyTorch forward pass."""
    def proj(x, w, b):
        return x @ w + b[0]

    qp = proj(q, params["wq"], params["bq"])
    kp = proj(k, params["wk"], params["bk"])
    vp = proj(v, params["wv"], params["bv"])

    B, Nq, D = qp.shape
    dh = D // num_heads

    def sep(x):
        b, t, c = x.shape
        return x.reshape(b, t, num_heads, c // num_heads).transpose(0, 2, 1, 3)

    qh, kh, vh = sep(qp), sep(kp), sep(vp)
    attn = jnp.einsum("bhqd,bhkd->bhqk", qh, kh) / math.sqrt(dh)
    attn = jax.nn.softmax(attn, axis=-1)
    out = jnp.einsum("bhqk,bhkd->bhqd", attn, vh)
    out = out.transpose(0, 2, 1, 3).reshape(B, Nq, D)
    return out @ params["wo"] + params["bo"][0]


def init_params(key, embedding_dim, internal_dim):
    """Deterministic init mimicking nn.Linear (uniform(-1/sqrt(fan_in), ...))."""
    ks = jax.random.split(key, 8)

    def lin(kw, kb, fan_in, fan_out):
        bound = 1.0 / math.sqrt(fan_in)
        w = jax.random.uniform(kw, (fan_in, fan_out), jnp.float32, -bound, bound)
        b = jax.random.uniform(kb, (1, fan_out), jnp.float32, -bound, bound)
        return w, b

    wq, bq = lin(ks[0], ks[1], embedding_dim, internal_dim)
    wk, bk = lin(ks[2], ks[3], embedding_dim, internal_dim)
    wv, bv = lin(ks[4], ks[5], embedding_dim, internal_dim)
    wo, bo = lin(ks[6], ks[7], internal_dim, embedding_dim)
    return dict(wq=wq, bq=bq, wk=wk, bk=bk, wv=wv, bv=bv, wo=wo, bo=bo)


if __name__ == "__main__":
    embedding_dim = 32
    num_heads = 4
    downsample_rate = 1
    internal_dim = embedding_dim // downsample_rate

    B, Nq, Nk = 2, 8, 8

    key = jax.random.PRNGKey(0)
    kq, kk, kv, kp = jax.random.split(key, 4)
    q = jax.random.normal(kq, (B, Nq, embedding_dim), jnp.float32)
    k = jax.random.normal(kk, (B, Nk, embedding_dim), jnp.float32)
    v = jax.random.normal(kv, (B, Nk, embedding_dim), jnp.float32)
    params = init_params(kp, embedding_dim, internal_dim)

    out = attention_pallas(q, k, v, params, num_heads)
    out = jax.block_until_ready(out)

    ref = attention_reference(q, k, v, params, num_heads)
    assert out.shape == (B, Nq, embedding_dim)
    # Newton-refined reciprocal -> near-exact f32 softmax; tight tolerance.
    assert jnp.allclose(out, ref, atol=1e-4, rtol=1e-4), "mismatch vs reference"

    print("KERNEL_OK")
</pallas_src>

<mosaic_0001>
module attributes {stable_mosaic.version = 11 : i64} {
  func.func @kernel(%arg0: i32, %arg1: memref<8x128xf32, #tpu.memory_space<vmem>>, %arg2: memref<8x128xf32, #tpu.memory_space<vmem>>, %arg3: memref<8x128xf32, #tpu.memory_space<vmem>>, %arg4: memref<128x32xf32, #tpu.memory_space<vmem>>, %arg5: memref<1x32xf32, #tpu.memory_space<vmem>>, %arg6: memref<128x32xf32, #tpu.memory_space<vmem>>, %arg7: memref<1x32xf32, #tpu.memory_space<vmem>>, %arg8: memref<128x32xf32, #tpu.memory_space<vmem>>, %arg9: memref<1x32xf32, #tpu.memory_space<vmem>>, %arg10: memref<32x128xf32, #tpu.memory_space<vmem>>, %arg11: memref<1x128xf32, #tpu.memory_space<vmem>>, %arg12: memref<8x128xf32, #tpu.memory_space<vmem>>) attributes {dimension_semantics = [#tpu.dimension_semantics<parallel>], iteration_bounds = array<i64: 2>, scalar_prefetch = 0 : i64, scratch_operands = 0 : i64, tpu.core_type = #tpu.core_type<tc>, window_params = [{transform_indices = @transform_0, window_bounds = array<i64: 8, 128>}, {transform_indices = @transform_1, window_bounds = array<i64: 8, 128>}, {transform_indices = @transform_2, window_bounds = array<i64: 8, 128>}, {pipeline_mode = #tpu.pipeline_mode<synchronous>, transform_indices = @transform_3, window_bounds = array<i64: 128, 32>}, {pipeline_mode = #tpu.pipeline_mode<synchronous>, transform_indices = @transform_4, window_bounds = array<i64: 1, 32>}, {pipeline_mode = #tpu.pipeline_mode<synchronous>, transform_indices = @transform_5, window_bounds = array<i64: 128, 32>}, {pipeline_mode = #tpu.pipeline_mode<synchronous>, transform_indices = @transform_6, window_bounds = array<i64: 1, 32>}, {pipeline_mode = #tpu.pipeline_mode<synchronous>, transform_indices = @transform_7, window_bounds = array<i64: 128, 32>}, {pipeline_mode = #tpu.pipeline_mode<synchronous>, transform_indices = @transform_8, window_bounds = array<i64: 1, 32>}, {pipeline_mode = #tpu.pipeline_mode<synchronous>, transform_indices = @transform_9, window_bounds = array<i64: 32, 128>}, {pipeline_mode = #tpu.pipeline_mode<synchronous>, transform_indices = @transform_10, window_bounds = array<i64: 1, 128>}, {transform_indices = @transform_11, window_bounds = array<i64: 8, 128>}]} {
    %c0 = arith.constant 0 : index
    %c0_0 = arith.constant 0 : index
    %0 = vector.load %arg1[%c0, %c0_0] : memref<8x128xf32, #tpu.memory_space<vmem>>, vector<8x128xf32>
    %c0_1 = arith.constant 0 : index
    %c0_2 = arith.constant 0 : index
    %1 = vector.load %arg4[%c0_1, %c0_2] : memref<128x32xf32, #tpu.memory_space<vmem>>, vector<128x32xf32>
    %cst = arith.constant dense<0.000000e+00> : vector<8x32xf32>
    %2 = tpu.matmul %0, %1, %cst {dimension_numbers = #tpu.dot_dimension_numbers<[1], [0], [0], [1], [0, 0, 1, 1], [], []>} : vector<8x128xf32>, vector<128x32xf32>, vector<8x32xf32> -> vector<8x32xf32>
    %c0_3 = arith.constant 0 : index
    %c0_4 = arith.constant 0 : index
    %3 = vector.load %arg5[%c0_3, %c0_4] : memref<1x32xf32, #tpu.memory_space<vmem>>, vector<1x32xf32>
    %4 = vector.broadcast %3 : vector<1x32xf32> to vector<8x32xf32>
    %5 = arith.addf %2, %4 : vector<8x32xf32>
    %c0_5 = arith.constant 0 : index
    %c0_6 = arith.constant 0 : index
    %6 = vector.load %arg2[%c0_5, %c0_6] : memref<8x128xf32, #tpu.memory_space<vmem>>, vector<8x128xf32>
    %c0_7 = arith.constant 0 : index
    %c0_8 = arith.constant 0 : index
    %7 = vector.load %arg6[%c0_7, %c0_8] : memref<128x32xf32, #tpu.memory_space<vmem>>, vector<128x32xf32>
    %cst_9 = arith.constant dense<0.000000e+00> : vector<8x32xf32>
    %8 = tpu.matmul %6, %7, %cst_9 {dimension_numbers = #tpu.dot_dimension_numbers<[1], [0], [0], [1], [0, 0, 1, 1], [], []>} : vector<8x128xf32>, vector<128x32xf32>, vector<8x32xf32> -> vector<8x32xf32>
    %c0_10 = arith.constant 0 : index
    %c0_11 = arith.constant 0 : index
    %9 = vector.load %arg7[%c0_10, %c0_11] : memref<1x32xf32, #tpu.memory_space<vmem>>, vector<1x32xf32>
    %10 = vector.broadcast %9 : vector<1x32xf32> to vector<8x32xf32>
    %11 = arith.addf %8, %10 : vector<8x32xf32>
    %c0_12 = arith.constant 0 : index
    %c0_13 = arith.constant 0 : index
    %12 = vector.load %arg3[%c0_12, %c0_13] : memref<8x128xf32, #tpu.memory_space<vmem>>, vector<8x128xf32>
    %c0_14 = arith.constant 0 : index
    %c0_15 = arith.constant 0 : index
    %13 = vector.load %arg8[%c0_14, %c0_15] : memref<128x32xf32, #tpu.memory_space<vmem>>, vector<128x32xf32>
    %cst_16 = arith.constant dense<0.000000e+00> : vector<8x32xf32>
    %14 = tpu.matmul %12, %13, %cst_16 {dimension_numbers = #tpu.dot_dimension_numbers<[1], [0], [0], [1], [0, 0, 1, 1], [], []>} : vector<8x128xf32>, vector<128x32xf32>, vector<8x32xf32> -> vector<8x32xf32>
    %c0_17 = arith.constant 0 : index
    %c0_18 = arith.constant 0 : index
    %15 = vector.load %arg9[%c0_17, %c0_18] : memref<1x32xf32, #tpu.memory_space<vmem>>, vector<1x32xf32>
    %16 = vector.broadcast %15 : vector<1x32xf32> to vector<8x32xf32>
    %17 = arith.addf %14, %16 : vector<8x32xf32>
    %cst_19 = arith.constant 0.000000e+00 : f32
    %18 = vector.broadcast %cst_19 : f32 to vector<8x128xf32>
    %19 = vector.extract_strided_slice %5 {offsets = [0, 0], sizes = [8, 8], strides = [1, 1]} : vector<8x32xf32> to vector<8x8xf32>
    %20 = vector.extract_strided_slice %11 {offsets = [0, 0], sizes = [8, 8], strides = [1, 1]} : vector<8x32xf32> to vector<8x8xf32>
    %21 = vector.extract_strided_slice %17 {offsets = [0, 0], sizes = [8, 8], strides = [1, 1]} : vector<8x32xf32> to vector<8x8xf32>
    %cst_20 = arith.constant dense<0.000000e+00> : vector<8x8xf32>
    %22 = tpu.matmul %19, %20, %cst_20 {dimension_numbers = #tpu.dot_dimension_numbers<[1], [1], [0], [0], [0, 0, 1, 0], [], []>} : vector<8x8xf32>, vector<8x8xf32>, vector<8x8xf32> -> vector<8x8xf32>
    %cst_21 = arith.constant dense<0xFF800000> : vector<8xf32>
    %23 = vector.multi_reduction <maximumf>, %22, %cst_21 [1] : vector<8x8xf32> to vector<8xf32>
    %24 = vector.shape_cast %23 : vector<8xf32> to vector<8x1xf32>
    %25 = vector.broadcast %24 : vector<8x1xf32> to vector<8x8xf32>
    %26 = arith.subf %22, %25 : vector<8x8xf32>
    %27 = math.exp %26 : vector<8x8xf32>
    %cst_22 = arith.constant dense<0.000000e+00> : vector<8xf32>
    %28 = vector.multi_reduction <add>, %27, %cst_22 [1] : vector<8x8xf32> to vector<8xf32>
    %29 = vector.shape_cast %28 : vector<8xf32> to vector<8x1xf32>
    %30 = tpu.reciprocal %29 {approx = true} : vector<8x1xf32> -> vector<8x1xf32>
    %31 = arith.mulf %29, %30 : vector<8x1xf32>
    %cst_23 = arith.constant 2.000000e+00 : f32
    %32 = vector.broadcast %cst_23 : f32 to vector<8x1xf32>
    %33 = arith.subf %32, %31 : vector<8x1xf32>
    %34 = arith.mulf %30, %33 : vector<8x1xf32>
    %35 = vector.broadcast %34 : vector<8x1xf32> to vector<8x8xf32>
    %36 = arith.mulf %27, %35 : vector<8x8xf32>
    %cst_24 = arith.constant dense<0.000000e+00> : vector<8x8xf32>
    %37 = tpu.matmul %36, %21, %cst_24 {dimension_numbers = #tpu.dot_dimension_numbers<[1], [0], [0], [1], [0, 0, 1, 1], [], []>} : vector<8x8xf32>, vector<8x8xf32>, vector<8x8xf32> -> vector<8x8xf32>
    %c0_25 = arith.constant 0 : index
    %c0_26 = arith.constant 0 : index
    %38 = vector.load %arg10[%c0_25, %c0_26] : memref<32x128xf32, #tpu.memory_space<vmem>>, vector<8x128xf32>
    %cst_27 = arith.constant dense<0.000000e+00> : vector<8x128xf32>
    %39 = tpu.matmul %37, %38, %cst_27 {dimension_numbers = #tpu.dot_dimension_numbers<[1], [0], [0], [1], [0, 0, 1, 1], [], []>} : vector<8x8xf32>, vector<8x128xf32>, vector<8x128xf32> -> vector<8x128xf32>
    %40 = arith.addf %18, %39 : vector<8x128xf32>
    %41 = vector.extract_strided_slice %5 {offsets = [0, 8], sizes = [8, 8], strides = [1, 1]} : vector<8x32xf32> to vector<8x8xf32>
    %42 = vector.extract_strided_slice %11 {offsets = [0, 8], sizes = [8, 8], strides = [1, 1]} : vector<8x32xf32> to vector<8x8xf32>
    %43 = vector.extract_strided_slice %17 {offsets = [0, 8], sizes = [8, 8], strides = [1, 1]} : vector<8x32xf32> to vector<8x8xf32>
    %cst_28 = arith.constant dense<0.000000e+00> : vector<8x8xf32>
    %44 = tpu.matmul %41, %42, %cst_28 {dimension_numbers = #tpu.dot_dimension_numbers<[1], [1], [0], [0], [0, 0, 1, 0], [], []>} : vector<8x8xf32>, vector<8x8xf32>, vector<8x8xf32> -> vector<8x8xf32>
    %cst_29 = arith.constant dense<0xFF800000> : vector<8xf32>
    %45 = vector.multi_reduction <maximumf>, %44, %cst_29 [1] : vector<8x8xf32> to vector<8xf32>
    %46 = vector.shape_cast %45 : vector<8xf32> to vector<8x1xf32>
    %47 = vector.broadcast %46 : vector<8x1xf32> to vector<8x8xf32>
    %48 = arith.subf %44, %47 : vector<8x8xf32>
    %49 = math.exp %48 : vector<8x8xf32>
    %cst_30 = arith.constant dense<0.000000e+00> : vector<8xf32>
    %50 = vector.multi_reduction <add>, %49, %cst_30 [1] : vector<8x8xf32> to vector<8xf32>
    %51 = vector.shape_cast %50 : vector<8xf32> to vector<8x1xf32>
    %52 = tpu.reciprocal %51 {approx = true} : vector<8x1xf32> -> vector<8x1xf32>
    %53 = arith.mulf %51, %52 : vector<8x1xf32>
    %cst_31 = arith.constant 2.000000e+00 : f32
    %54 = vector.broadcast %cst_31 : f32 to vector<8x1xf32>
    %55 = arith.subf %54, %53 : vector<8x1xf32>
    %56 = arith.mulf %52, %55 : vector<8x1xf32>
    %57 = vector.broadcast %56 : vector<8x1xf32> to vector<8x8xf32>
    %58 = arith.mulf %49, %57 : vector<8x8xf32>
    %cst_32 = arith.constant dense<0.000000e+00> : vector<8x8xf32>
    %59 = tpu.matmul %58, %43, %cst_32 {dimension_numbers = #tpu.dot_dimension_numbers<[1], [0], [0], [1], [0, 0, 1, 1], [], []>} : vector<8x8xf32>, vector<8x8xf32>, vector<8x8xf32> -> vector<8x8xf32>
    %c8 = arith.constant 8 : index
    %c0_33 = arith.constant 0 : index
    %60 = vector.load %arg10[%c8, %c0_33] : memref<32x128xf32, #tpu.memory_space<vmem>>, vector<8x128xf32>
    %cst_34 = arith.constant dense<0.000000e+00> : vector<8x128xf32>
    %61 = tpu.matmul %59, %60, %cst_34 {dimension_numbers = #tpu.dot_dimension_numbers<[1], [0], [0], [1], [0, 0, 1, 1], [], []>} : vector<8x8xf32>, vector<8x128xf32>, vector<8x128xf32> -> vector<8x128xf32>
    %62 = arith.addf %40, %61 : vector<8x128xf32>
    %63 = vector.extract_strided_slice %5 {offsets = [0, 16], sizes = [8, 8], strides = [1, 1]} : vector<8x32xf32> to vector<8x8xf32>
    %64 = vector.extract_strided_slice %11 {offsets = [0, 16], sizes = [8, 8], strides = [1, 1]} : vector<8x32xf32> to vector<8x8xf32>
    %65 = vector.extract_strided_slice %17 {offsets = [0, 16], sizes = [8, 8], strides = [1, 1]} : vector<8x32xf32> to vector<8x8xf32>
    %cst_35 = arith.constant dense<0.000000e+00> : vector<8x8xf32>
    %66 = tpu.matmul %63, %64, %cst_35 {dimension_numbers = #tpu.dot_dimension_numbers<[1], [1], [0], [0], [0, 0, 1, 0], [], []>} : vector<8x8xf32>, vector<8x8xf32>, vector<8x8xf32> -> vector<8x8xf32>
    %cst_36 = arith.constant dense<0xFF800000> : vector<8xf32>
    %67 = vector.multi_reduction <maximumf>, %66, %cst_36 [1] : vector<8x8xf32> to vector<8xf32>
    %68 = vector.shape_cast %67 : vector<8xf32> to vector<8x1xf32>
    %69 = vector.broadcast %68 : vector<8x1xf32> to vector<8x8xf32>
    %70 = arith.subf %66, %69 : vector<8x8xf32>
    %71 = math.exp %70 : vector<8x8xf32>
    %cst_37 = arith.constant dense<0.000000e+00> : vector<8xf32>
    %72 = vector.multi_reduction <add>, %71, %cst_37 [1] : vector<8x8xf32> to vector<8xf32>
    %73 = vector.shape_cast %72 : vector<8xf32> to vector<8x1xf32>
    %74 = tpu.reciprocal %73 {approx = true} : vector<8x1xf32> -> vector<8x1xf32>
    %75 = arith.mulf %73, %74 : vector<8x1xf32>
    %cst_38 = arith.constant 2.000000e+00 : f32
    %76 = vector.broadcast %cst_38 : f32 to vector<8x1xf32>
    %77 = arith.subf %76, %75 : vector<8x1xf32>
    %78 = arith.mulf %74, %77 : vector<8x1xf32>
    %79 = vector.broadcast %78 : vector<8x1xf32> to vector<8x8xf32>
    %80 = arith.mulf %71, %79 : vector<8x8xf32>
    %cst_39 = arith.constant dense<0.000000e+00> : vector<8x8xf32>
    %81 = tpu.matmul %80, %65, %cst_39 {dimension_numbers = #tpu.dot_dimension_numbers<[1], [0], [0], [1], [0, 0, 1, 1], [], []>} : vector<8x8xf32>, vector<8x8xf32>, vector<8x8xf32> -> vector<8x8xf32>
    %c16 = arith.constant 16 : index
    %c0_40 = arith.constant 0 : index
    %82 = vector.load %arg10[%c16, %c0_40] : memref<32x128xf32, #tpu.memory_space<vmem>>, vector<8x128xf32>
    %cst_41 = arith.constant dense<0.000000e+00> : vector<8x128xf32>
    %83 = tpu.matmul %81, %82, %cst_41 {dimension_numbers = #tpu.dot_dimension_numbers<[1], [0], [0], [1], [0, 0, 1, 1], [], []>} : vector<8x8xf32>, vector<8x128xf32>, vector<8x128xf32> -> vector<8x128xf32>
    %84 = arith.addf %62, %83 : vector<8x128xf32>
    %85 = vector.extract_strided_slice %5 {offsets = [0, 24], sizes = [8, 8], strides = [1, 1]} : vector<8x32xf32> to vector<8x8xf32>
    %86 = vector.extract_strided_slice %11 {offsets = [0, 24], sizes = [8, 8], strides = [1, 1]} : vector<8x32xf32> to vector<8x8xf32>
    %87 = vector.extract_strided_slice %17 {offsets = [0, 24], sizes = [8, 8], strides = [1, 1]} : vector<8x32xf32> to vector<8x8xf32>
    %cst_42 = arith.constant dense<0.000000e+00> : vector<8x8xf32>
    %88 = tpu.matmul %85, %86, %cst_42 {dimension_numbers = #tpu.dot_dimension_numbers<[1], [1], [0], [0], [0, 0, 1, 0], [], []>} : vector<8x8xf32>, vector<8x8xf32>, vector<8x8xf32> -> vector<8x8xf32>
    %cst_43 = arith.constant dense<0xFF800000> : vector<8xf32>
    %89 = vector.multi_reduction <maximumf>, %88, %cst_43 [1] : vector<8x8xf32> to vector<8xf32>
    %90 = vector.shape_cast %89 : vector<8xf32> to vector<8x1xf32>
    %91 = vector.broadcast %90 : vector<8x1xf32> to vector<8x8xf32>
    %92 = arith.subf %88, %91 : vector<8x8xf32>
    %93 = math.exp %92 : vector<8x8xf32>
    %cst_44 = arith.constant dense<0.000000e+00> : vector<8xf32>
    %94 = vector.multi_reduction <add>, %93, %cst_44 [1] : vector<8x8xf32> to vector<8xf32>
    %95 = vector.shape_cast %94 : vector<8xf32> to vector<8x1xf32>
    %96 = tpu.reciprocal %95 {approx = true} : vector<8x1xf32> -> vector<8x1xf32>
    %97 = arith.mulf %95, %96 : vector<8x1xf32>
    %cst_45 = arith.constant 2.000000e+00 : f32
    %98 = vector.broadcast %cst_45 : f32 to vector<8x1xf32>
    %99 = arith.subf %98, %97 : vector<8x1xf32>
    %100 = arith.mulf %96, %99 : vector<8x1xf32>
    %101 = vector.broadcast %100 : vector<8x1xf32> to vector<8x8xf32>
    %102 = arith.mulf %93, %101 : vector<8x8xf32>
    %cst_46 = arith.constant dense<0.000000e+00> : vector<8x8xf32>
    %103 = tpu.matmul %102, %87, %cst_46 {dimension_numbers = #tpu.dot_dimension_numbers<[1], [0], [0], [1], [0, 0, 1, 1], [], []>} : vector<8x8xf32>, vector<8x8xf32>, vector<8x8xf32> -> vector<8x8xf32>
    %c24 = arith.constant 24 : index
    %c0_47 = arith.constant 0 : index
    %104 = vector.load %arg10[%c24, %c0_47] : memref<32x128xf32, #tpu.memory_space<vmem>>, vector<8x128xf32>
    %cst_48 = arith.constant dense<0.000000e+00> : vector<8x128xf32>
    %105 = tpu.matmul %103, %104, %cst_48 {dimension_numbers = #tpu.dot_dimension_numbers<[1], [0], [0], [1], [0, 0, 1, 1], [], []>} : vector<8x8xf32>, vector<8x128xf32>, vector<8x128xf32> -> vector<8x128xf32>
    %106 = arith.addf %84, %105 : vector<8x128xf32>
    %c0_49 = arith.constant 0 : index
    %c0_50 = arith.constant 0 : index
    %107 = vector.load %arg11[%c0_49, %c0_50] : memref<1x128xf32, #tpu.memory_space<vmem>>, vector<1x128xf32>
    %108 = vector.broadcast %107 : vector<1x128xf32> to vector<8x128xf32>
    %109 = arith.addf %106, %108 : vector<8x128xf32>
    %c0_51 = arith.constant 0 : index
    %c0_52 = arith.constant 0 : index
    %110 = vector.load %arg12[%c0_51, %c0_52] : memref<8x128xf32, #tpu.memory_space<vmem>>, vector<8x128xf32>
    tpu.vector_store %arg12[%c0_51, %c0_52], %109 {strides = array<i32>} : memref<8x128xf32, #tpu.memory_space<vmem>>, vector<8x128xf32>,
    return
  }
  func.func @transform_0(%arg0: i32) -> (i32, i32) {
    %c0_i32 = arith.constant 0 : i32
    %c0_i32_0 = arith.constant 0 : i32
    return %arg0, %c0_i32 : i32, i32
  }
  func.func @transform_1(%arg0: i32) -> (i32, i32) {
    %c0_i32 = arith.constant 0 : i32
    %c0_i32_0 = arith.constant 0 : i32
    return %arg0, %c0_i32 : i32, i32
  }
  func.func @transform_2(%arg0: i32) -> (i32, i32) {
    %c0_i32 = arith.constant 0 : i32
    %c0_i32_0 = arith.constant 0 : i32
    return %arg0, %c0_i32 : i32, i32
  }
  func.func @transform_3(%arg0: i32) -> (i32, i32) {
    %c0_i32 = arith.constant 0 : i32
    %c0_i32_0 = arith.constant 0 : i32
    %c0_i32_1 = arith.constant 0 : i32
    return %c0_i32, %c0_i32_0 : i32, i32
  }
  func.func @transform_4(%arg0: i32) -> (i32, i32) {
    %c0_i32 = arith.constant 0 : i32
    %c0_i32_0 = arith.constant 0 : i32
    %c0_i32_1 = arith.constant 0 : i32
    return %c0_i32, %c0_i32_0 : i32, i32
  }
  func.func @transform_5(%arg0: i32) -> (i32, i32) {
    %c0_i32 = arith.constant 0 : i32
    %c0_i32_0 = arith.constant 0 : i32
    %c0_i32_1 = arith.constant 0 : i32
    return %c0_i32, %c0_i32_0 : i32, i32
  }
  func.func @transform_6(%arg0: i32) -> (i32, i32) {
    %c0_i32 = arith.constant 0 : i32
    %c0_i32_0 = arith.constant 0 : i32
    %c0_i32_1 = arith.constant 0 : i32
    return %c0_i32, %c0_i32_0 : i32, i32
  }
  func.func @transform_7(%arg0: i32) -> (i32, i32) {
    %c0_i32 = arith.constant 0 : i32
    %c0_i32_0 = arith.constant 0 : i32
    %c0_i32_1 = arith.constant 0 : i32
    return %c0_i32, %c0_i32_0 : i32, i32
  }
  func.func @transform_8(%arg0: i32) -> (i32, i32) {
    %c0_i32 = arith.constant 0 : i32
    %c0_i32_0 = arith.constant 0 : i32
    %c0_i32_1 = arith.constant 0 : i32
    return %c0_i32, %c0_i32_0 : i32, i32
  }
  func.func @transform_9(%arg0: i32) -> (i32, i32) {
    %c0_i32 = arith.constant 0 : i32
    %c0_i32_0 = arith.constant 0 : i32
    %c0_i32_1 = arith.constant 0 : i32
    return %c0_i32, %c0_i32_0 : i32, i32
  }
  func.func @transform_10(%arg0: i32) -> (i32, i32) {
    %c0_i32 = arith.constant 0 : i32
    %c0_i32_0 = arith.constant 0 : i32
    %c0_i32_1 = arith.constant 0 : i32
    return %c0_i32, %c0_i32_0 : i32, i32
  }
  func.func @transform_11(%arg0: i32) -> (i32, i32) {
    %c0_i32 = arith.constant 0 : i32
    %c0_i32_0 = arith.constant 0 : i32
    return %arg0, %c0_i32 : i32, i32
  }
}

</mosaic_0001>

<bundles_post_ra>
// kernel: tpu_custom_call.1
= control target key start
LH: loop header
LB: loop body
LE: loop exit
PB: predicated region body
PF: predicated region fallthrough
CT: control target
= control target key end

     0   :  { %s2697_s0 = inlined_call_operand.vmem [shape: f32[16,128], index: 0, kind: input, shape index: {}]   ;;  %s2698_s1 = inlined_call_operand.vmem [shape: f32[16,128], index: 1, kind: input, shape index: {}]   ;;  %s2699_s2 = inlined_call_operand.vmem [shape: f32[16,128], index: 2, kind: input, shape index: {}]   ;;  %s2700_s3 = inlined_call_operand.vmem [shape: f32[128,32], index: 3, kind: input, shape index: {}]   ;;  %s2701_s4 = inlined_call_operand.vmem [shape: f32[1,32], index: 4, kind: input, shape index: {}]   ;;  %s2702_s5 = inlined_call_operand.vmem [shape: f32[128,32], index: 5, kind: input, shape index: {}]   ;;  %s2703_s6 = inlined_call_operand.vmem [shape: f32[1,32], index: 6, kind: input, shape index: {}]   ;;  %s2704_s7 = inlined_call_operand.vmem [shape: f32[128,32], index: 7, kind: input, shape index: {}]   ;;  %s2705_s8 = inlined_call_operand.vmem [shape: f32[1,32], index: 8, kind: input, shape index: {}]   ;;  %s2706_s9 = inlined_call_operand.vmem [shape: f32[32,128], index: 9, kind: input, shape index: {}]   ;;  %s2707_s10 = inlined_call_operand.vmem [shape: f32[1,128], index: 10, kind: input, shape index: {}]   ;;  %s2708_s11 = inlined_call_operand.hbm [shape: f32[16,128], index: 11, kind: output, shape index: {}]  }
   0x1   :  { %2710 = sst [smem:[#allocation5_spill]] %s2697_s0 }
   0x2   :  { %16 = vsyncpa [#allocation3], 0 }
   0x3   :  { %18 = vsyncpa [#allocation3 + $0x1], 0  ;;  %s2307_s17 = smov 0   ;;  %s2309_s18 = smov 0  }
   0x4   :  { %s2311_s19 = smov 0   ;;  %s2313_s20 = smov 0  }
   0x5 LB: > { %s2328_s21 = sadd.s32 4294967295, %s2238_s20   ;;  %s1771_s22 = sadd.s32 4294967294, %s2238_s20   ;;  %s2238_s20 = sphi %s2313_s20, %s2718_s20   ;;  %s2234_s19 = sphi %s2311_s19, %s2717_s19   ;;  %s2230_s18 = sphi %s2309_s18, %s2716_s18   ;;  %s2226_s17 = sphi %s2307_s17, %s2715_s17  }
   0x6   : > { %s2332_s23 = sadd.s32 1, %s2238_s20   ;;  %s277_s24 = sadd.s32 1, %s2234_s19 }
   0x7   : > { %s274_s25 = ssub.s32 %s2238_s20, %s2332_s23  ;;  %p287_p0 = scmp.ne.s32.totalorder %s2234_s19, %s2230_s18 }
   0x8   : > { %p275_p1 = scmp.eq.s32.totalorder %s274_s25, 0  ;;  %p288_p2 = scmp.eq.s32.totalorder %s2328_s21, 1 }
   0x9   : > { %p293_p3 = scmp.ne.s32.totalorder %s2230_s18, %s2226_s17  ;;  %p294_p4 = scmp.eq.s32.totalorder %s1771_s22, 1 }
   0xa   : > { %s2343_s26 = scalar_select %p275_p1, %s2234_s19, %s277_s24  }
   0xb   : > { %p2345_p5 = por %p288_p2, %p287_p0  ;;  %p2349_p6 = por %p294_p4, %p293_p3 }
   0xc   : > { %p1774_p7 = scmp.ge.s32.totalorder %s2238_s20, 1  ;;  %p357_p8 = scmp.lt.s32.totalorder %s2238_s20, 3 }
   0xe   : > { %p358_p9 = pnand %p1774_p7, %p357_p8 }
   0xf   : > { %v511_v0 = vld [vmem:[%s2702_s5] sm:$0xff] (!%p358_p9)  ;;  %v512_v1 = vld [vmem:[%s2702_s5 + $0x8] sm:$0xff] (!%p358_p9)  ;;  %v2240_v3 = vmov (!%p358_p9), 0.0|0.0   ;;  %v513_v6 = vld [vmem:[%s2702_s5 + $0x10] sm:$0xff] (!%p358_p9)  ;;  %vm2241_vm0 = vmmov (!%p358_p9), 0   ;;  %v2242_v11 = vmov (!%p358_p9), 0.0  }
  0x10   : > { %361 = sbr.rel (%p358_p9) target bundleno = 3067 (0xbfb), region = 64  ;;  %v417_v2 = vld [vmem:[%s2700_s3] sm:$0xff] (!%p358_p9)  ;;  %2067 = vmatprep.subr.bf16.mxu1 (!%p358_p9), %v2240_v3  ;;  %v2068_v4 = vpack.c.bf16 (!%p358_p9), %v512_v1, %v511_v0  ;;  %2043 = vmatprep.subr.bf16.mxu0 (!%p358_p9), %v2240_v3  ;;  %v418_v5 = vld [vmem:[%s2700_s3 + $0x8] sm:$0xff] (!%p358_p9)  ;;  %v514_v7 = vld [vmem:[%s2702_s5 + $0x18] sm:$0xff] (!%p358_p9)  ;;  %p404_p10 = scmp.lt.s32.totalorder (!%p358_p9), %s2328_s21, 1  ;;  %vm698_vm1 = vcmask (!%p358_p9), 64512  }
  0x11   : > { %v2044_v8 = vpack.c.bf16 (!%p358_p9), %v418_v5, %v417_v2  ;;  %v419_v9 = vld [vmem:[%s2700_s3 + $0x10] sm:$0xff] (!%p358_p9)  ;;  %v420_v10 = vld [vmem:[%s2700_s3 + $0x18] sm:$0xff] (!%p358_p9)  ;;  %1945 = vmatprep.mubr.msk.f32.mxu1 (!%p358_p9), %vm2241_vm0, %v2242_v11  ;;  %1910 = vmatprep.mubr.msk.f32.mxu0 (!%p358_p9), %vm2241_vm0, %v2242_v11  ;;  %v2071_v12 = vpack.c.bf16 (!%p358_p9), %v514_v7, %v513_v6  ;;  %v515_v14 = vld [vmem:[%s2702_s5 + $0x20] sm:$0xff] (!%p358_p9)  ;;  %s2713_s0 = sld [smem:[#allocation5_spill]] (!%p358_p9)  ;;  %s2709_s24 = smov (!%p358_p9), 120  }
  0x12   : > { %2069 = vmatpush3.bf16.msra.mxu1 (!%p358_p9), %v2068_v4  ;;  %v2047_v13 = vpack.c.bf16 (!%p358_p9), %v420_v10, %v419_v9  ;;  %v516_v15 = vld [vmem:[%s2702_s5 + $0x28] sm:$0xff] (!%p358_p9)  ;;  %v421_v16 = vld [vmem:[%s2700_s3 + $0x20] sm:$0xff] (!%p358_p9)  ;;  %v517_v20 = vld [vmem:[%s2702_s5 + $0x30] sm:$0xff] (!%p358_p9)  ;;  %s2244_s29 = smov (!%p358_p9), 112   ;;  %s2245_s14 = smov (!%p358_p9), 104  }
  0x13   : > { %2045 = vmatpush3.bf16.msra.mxu0 (!%p358_p9), %v2044_v8  ;;  %2070 = vmatprep.subr.bf16.mxu1 (!%p358_p9), %v2240_v3  ;;  %v422_v17 = vld [vmem:[%s2700_s3 + $0x28] sm:$0xff] (!%p358_p9)  ;;  %v2074_v18 = vpack.c.bf16 (!%p358_p9), %v516_v15, %v515_v14  ;;  %v518_v21 = vld [vmem:[%s2702_s5 + $0x38] sm:$0xff] (!%p358_p9)  ;;  %v423_v22 = vld [vmem:[%s2700_s3 + $0x30] sm:$0xff] (!%p358_p9)  ;;  %s1800_s13 = sshll.u32 (!%p358_p9), %s2328_s21, 7 }
  0x14   : > { %2046 = vmatprep.subr.bf16.mxu0 (!%p358_p9), %v2240_v3  ;;  %v2050_v19 = vpack.c.bf16 (!%p358_p9), %v422_v17, %v421_v16  ;;  %v424_v23 = vld [vmem:[%s2700_s3 + $0x38] sm:$0xff] (!%p358_p9)  ;;  %v2077_v24 = vpack.c.bf16 (!%p358_p9), %v518_v21, %v517_v20  ;;  %v519_v26 = vld [vmem:[%s2702_s5 + $0x40] sm:$0xff] (!%p358_p9)  ;;  %v520_v27 = vld [vmem:[%s2702_s5 + $0x48] sm:$0xff] (!%p358_p9) }
  0x15   : > { %v2053_v25 = vpack.c.bf16 (!%p358_p9), %v424_v23, %v423_v22  ;;  %v425_v28 = vld [vmem:[%s2700_s3 + $0x40] sm:$0xff] (!%p358_p9)  ;;  %v426_v29 = vld [vmem:[%s2700_s3 + $0x48] sm:$0xff] (!%p358_p9)  ;;  %v2080_v30 = vpack.c.bf16 (!%p358_p9), %v520_v27, %v519_v26  ;;  %v521_v32 = vld [vmem:[%s2702_s5 + $0x50] sm:$0xff] (!%p358_p9) }
  0x16   : > { %2072 = vmatpush3.bf16.msra.mxu1 (!%p358_p9), %v2071_v12  ;;  %v2056_v31 = vpack.c.bf16 (!%p358_p9), %v426_v29, %v425_v28  ;;  %v522_v33 = vld [vmem:[%s2702_s5 + $0x58] sm:$0xff] (!%p358_p9)  ;;  %v427_v34 = vld [vmem:[%s2700_s3 + $0x50] sm:$0xff] (!%p358_p9)  ;;  %v523_v38 = vld [vmem:[%s2702_s5 + $0x60] sm:$0xff] (!%p358_p9) }
  0x17   : > { %2048 = vmatpush3.bf16.msra.mxu0 %v2047_v13  ;;  %2073 = vmatprep.subr.bf16.mxu1 %v2240_v3  ;;  %v428_v35 = vld [vmem:[%s2700_s3 + $0x58] sm:$0xff]  ;;  %v2083_v36 = vpack.c.bf16 %v522_v33, %v521_v32  ;;  %v524_v39 = vld [vmem:[%s2702_s5 + $0x68] sm:$0xff]  ;;  %v429_v40 = vld [vmem:[%s2700_s3 + $0x60] sm:$0xff]  ;;  %s405_s16 = scalar_select %p404_p10, %s2328_s21, 1 }
  0x18   : > { %2049 = vmatprep.subr.bf16.mxu0 %v2240_v3  ;;  %v2059_v37 = vpack.c.bf16 %v428_v35, %v427_v34  ;;  %v430_v41 = vld [vmem:[%s2700_s3 + $0x68] sm:$0xff]  ;;  %v2086_v42 = vpack.c.bf16 %v524_v39, %v523_v38  ;;  %v525_v44 = vld [vmem:[%s2702_s5 + $0x70] sm:$0xff]  ;;  %v526_v45 = vld [vmem:[%s2702_s5 + $0x78] sm:$0xff]  ;;  %s2246_s21 = smov [#allocation2]  }
  0x19   : > { %v2062_v43 = vpack.c.bf16 %v430_v41, %v429_v40  ;;  %v431_v46 = vld [vmem:[%s2700_s3 + $0x70] sm:$0xff]  ;;  %v432_v47 = vld [vmem:[%s2700_s3 + $0x78] sm:$0xff]  ;;  %s2471_s15 = sshll.u32 %s405_s16, 3  ;;  %v2089_v48 = vpack.c.bf16 %v526_v45, %v525_v44  ;;  %v1780_v52 = vld [vmem:[%s2703_s6] ss:$0 sm:$0xff] }
  0x1a   : > { %2075 = vmatpush3.bf16.msra.mxu1 %v2074_v18  ;;  %v2065_v49 = vpack.c.bf16 %v432_v47, %v431_v46  ;;  %s411_s25 = scalar_lea.vmem %s2698_s1, %s2471_s15  ;;  %s407_s12 = scalar_lea.vmem %s2713_s0, %s2471_s15  ;;  %v1779_v53 = vld [vmem:[%s2701_s4] ss:$0 sm:$0xff]  ;;  %v606_v61 = vld [vmem:[%s2704_s7 + $0x8] sm:$0xff]  ;;  %v607_v62 = vld [vmem:[%s2704_s7 + $0x10] sm:$0xff] }
  0x1b   : > { %2051 = vmatpush3.bf16.msra.mxu0 %v2050_v19  ;;  %2076 = vmatprep.subr.bf16.mxu1 %v2240_v3  ;;  %v510_v50 = vld [vmem:[%s411_s25] sm:$0xff]  ;;  %v608_v0 = vld [vmem:[%s2704_s7 + $0x18] sm:$0xff]  ;;  %v610_v4 = vld [vmem:[%s2704_s7 + $0x28] sm:$0xff]  ;;  %s2714_s25 = smov 120  }
  0x1c   : > { %2052 = vmatprep.subr.bf16.mxu0 %v2240_v3  ;;  %v416_v51 = vld [vmem:[%s407_s12] sm:$0xff]  ;;  %v2095_v1 = vpack.c.bf16 %v608_v0, %v607_v62  ;;  %v611_v6 = vld [vmem:[%s2704_s7 + $0x30] sm:$0xff]  ;;  %v612_v7 = vld [vmem:[%s2704_s7 + $0x38] sm:$0xff] }
  0x1d   : > { %v605_v60 = vld [vmem:[%s2704_s7] sm:$0xff]  ;;  %v2101_v8 = vpack.c.bf16 %v612_v7, %v611_v6  ;;  %v614_v10 = vld [vmem:[%s2704_s7 + $0x48] sm:$0xff]  ;;  %v615_v13 = vld [vmem:[%s2704_s7 + $0x50] sm:$0xff] }
  0x1e   : > { %2078 = vmatpush3.bf16.msra.mxu1 %v2077_v24  ;;  %v2092_v63 = vpack.c.bf16 %v606_v61, %v605_v60  ;;  %v609_v2 = vld [vmem:[%s2704_s7 + $0x20] sm:$0xff]  ;;  %v616_v14 = vld [vmem:[%s2704_s7 + $0x58] sm:$0xff]  ;;  %v618_v17 = vld [vmem:[%s2704_s7 + $0x68] sm:$0xff] }
  0x1f   : > { %2054 = vmatpush3.bf16.msra.mxu0 %v2053_v25  ;;  %2079 = vmatprep.subr.bf16.mxu1 %v2240_v3  ;;  %v2098_v5 = vpack.c.bf16 %v610_v4, %v609_v2  ;;  %v613_v9 = vld [vmem:[%s2704_s7 + $0x40] sm:$0xff]  ;;  %v2107_v15 = vpack.c.bf16 %v616_v14, %v615_v13  ;;  %v619_v19 = vld [vmem:[%s2704_s7 + $0x70] sm:$0xff]  ;;  %v620_v20 = vld [vmem:[%s2704_s7 + $0x78] sm:$0xff] }
  0x20   : > { %2055 = vmatprep.subr.bf16.mxu0 %v2240_v3  ;;  %v2104_v12 = vpack.c.bf16 %v614_v10, %v613_v9  ;;  %v617_v16 = vld [vmem:[%s2704_s7 + $0x60] sm:$0xff]  ;;  %v2113_v21 = vpack.c.bf16 %v620_v20, %v619_v19  ;;  %v1032_v61 = vld [vmem:[%s2706_s9 + $0x8] sm:$0xff] }
  0x21   : > { %v2110_v18 = vpack.c.bf16 %v618_v17, %v617_v16  ;;  %v862_v62 = vld [vmem:[%s2706_s9] sm:$0xff] }
  0x22   : > { %2081 = vmatpush3.bf16.msra.mxu1 %v2080_v30  ;;  %v1781_v30 = vld [vmem:[%s2705_s8] ss:$0 sm:$0xff] }
  0x23   : > { %2057 = vmatpush3.bf16.msra.mxu0 %v2056_v31  ;;  %2082 = vmatprep.subr.bf16.mxu1 %v2240_v3 }
  0x24   : > { %2058 = vmatprep.subr.bf16.mxu0 %v2240_v3 }
  0x26   : > { %2084 = vmatpush3.bf16.msra.mxu1 %v2083_v36 }
  0x27   : > { %2060 = vmatpush3.bf16.msra.mxu0 %v2059_v37  ;;  %2085 = vmatprep.subr.bf16.mxu1 %v2240_v3 }
  0x28   : > { %2061 = vmatprep.subr.bf16.mxu0 %v2240_v3 }
  0x2a   : > { %2087 = vmatpush3.bf16.msra.mxu1 %v2086_v42 }
  0x2b   : > { %2063 = vmatpush3.bf16.msra.mxu0 %v2062_v43  ;;  %2088 = vmatprep.subr.bf16.mxu1 %v2240_v3 }
  0x2c   : > { %2064 = vmatprep.subr.bf16.mxu0 %v2240_v3 }
  0x2e   : > { %2090 = vmatpush3.bf16.msra.mxu1 %v2089_v48 }
  0x2f   : > { %2066 = vmatpush3.bf16.msra.mxu0 %v2065_v49  ;;  %1983 = vmatprep.subr.mxu1 %v2242_v11 }
  0x30   : > { %2091 = vmatprep.subr.bf16.mxu0 %v2240_v3 }
  0x31   : > { %1946 = vmatmul.mubr.f32.vlgmr.msra.gmra.mrb[0].mxu1 %v510_v50 }
  0x32   : > { %1911 = vmatmul.mubr.f32.vlgmr.msra.gmra.mrb[0].mxu0 %v416_v51  ;;  %1985 = vmatprep.mubr.msk.f32.mxu1 %vm2241_vm0, %v2242_v11 }
  0x33   : > { %1980 = vmatprep.mubr.msk.f32.mxu0 %vm2241_vm0, %v2242_v11  ;;  %2093 = vmatpush3.bf16.msra.mxu0 %v2092_v63 }
  0x34   : > { %2094 = vmatprep.subr.bf16.mxu0 %v2240_v3 }
  0x37   : > { %2096 = vmatpush3.bf16.msra.mxu0 %v2095_v1 }
  0x38   : > { %2097 = vmatprep.subr.bf16.mxu0 %v2240_v3 }
  0x3b   : > { %2099 = vmatpush3.bf16.msra.mxu0 %v2098_v5 }
  0x3c   : > { %2100 = vmatprep.subr.bf16.mxu0 %v2240_v3 }
  0x3f   : > { %2102 = vmatpush3.bf16.msra.mxu0 %v2101_v8 }
  0x40   : > { %2103 = vmatprep.subr.bf16.mxu0 %v2240_v3 }
  0x43   : > { %2105 = vmatpush3.bf16.msra.mxu0 %v2104_v12 }
  0x44   : > { %2106 = vmatprep.subr.bf16.mxu0 %v2240_v3 }
  0x47   : > { %2108 = vmatpush3.bf16.msra.mxu0 %v2107_v15 }
  0x48   : > { %2109 = vmatprep.subr.bf16.mxu0 %v2240_v3 }
  0x4b   : > { %2111 = vmatpush3.bf16.msra.mxu0 %v2110_v18 }
  0x4c   : > { %2112 = vmatprep.subr.bf16.mxu0 %v2240_v3 }
  0x4f   : > { %2114 = vmatpush3.bf16.msra.mxu0 %v2113_v21 }
  0x50   : > { %2023 = vmatprep.subr.mxu0 %v2242_v11 }
 0x104   : > { %v600_v54 = vpop.f32.mrb[0].mxu1 }
 0x105   : > { %v2495_v55 = vadd.f32 %v1780_v52, %v600_v54  ;;  %v1947_v56 = vpop.f32.mrb[1].mxu1  ;;  %v506_v57 = vpop.f32.mrb[0].mxu0 }
 0x106   : > { %v2497_v58 = vadd.f32 %v1779_v53, %v506_v57  ;;  %v1912_v59 = vpop.f32.mrb[1].mxu0 }
 0x107   : > { %865 = vrot.lane.b32.xlu1 %v2495_v55, %s2709_s24  ;;  %1984 = vmatpush3.xpose.msk.msra.mxu1 %vm698_vm1, %v2495_v55 }
 0x108   : > { %1988 = vmatprep.subr.mxu1 %v2242_v11 }
 0x10a   : > { %1986 = vmatmul.mubr.msk.f32.vlgmr.msra.gmra.mrb[2].mxu1 %vm698_vm1, %v2497_v58 }
 0x10b   : > { %863 = vrot.lane.b32.xlu1 %v2497_v58, %s2709_s24  ;;  %1990 = vmatprep.mubr.msk.f32.mxu1 %vm2241_vm0, %v2242_v11  ;;  %s415_s24 = scalar_lea.vmem %s2699_s2, %s2471_s15 }
 0x10c   : > { %v604_v22 = vld [vmem:[%s415_s24] sm:$0xff] }
 0x10d   : > { %1981 = vmatmul.mubr.f32.vlgmr.msra.gmra.mrb[2].mxu0 %v604_v22 }
 0x10e   : > { %2025 = vmatprep.mubr.msk.f32.mxu0 %vm2241_vm0, %v2242_v11 }
 0x179   : > { %v866_v39 = vpop.permute.xlu1 %865 }
 0x17d   : > { %v864_v41 = vpop.permute.xlu1 %863 }
 0x1dd   : > { %v771_v23 = vpop.f32.mrb[2].mxu1 }
 0x1de   : > { %v1987_v24 = vpop.f32.mrb[3].mxu1  ;;  %v775_v25 = vsel %vm698_vm1, %v771_v23, -inf }
 0x1df   : > { %776 = vmax.xlane.f32.xlu0 %v775_v25 }
 0x1e0   : > { %v694_v31 = vpop.f32.mrb[2].mxu0 }
 0x1e1   : > { %v2577_v32 = vadd.f32 %v1781_v30, %v694_v31  ;;  %v1982_v33 = vpop.f32.mrb[3].mxu0 }
 0x1e3   : > { %1989 = vmatpush3.msra.mxu1 %v2577_v32 }
 0x1e4   : > { %1993 = vmatprep.subr.mxu1 %v2242_v11 }
 0x26c   : > { %v777_v26 = vpop.xlane.xlu0 %776 }
 0x26d   : > { %v778_v27 = vsub.f32 %v771_v23, %v777_v26 }
 0x26f   : > { %v779_v3 = vmul.f32 1.442695, %v778_v27 }
 0x271   : > { %2160 = vpow2.f32 %v779_v3 }
 0x27b   : > { %v2161_v28 = vpop.eup %2160 }
 0x27c   : > { %v781_v29 = vsel %vm698_vm1, %v2161_v28, 0.0 }
 0x27d   : > { %782 = vadd.xlane.f32.xlu0 %v781_v29 }
 0x30a   : > { %v783_v34 = vpop.xlane.xlu0 %782 }
 0x30b   : > { %2162 = vrcp.f32 %v783_v34 }
 0x315   : > { %v2163_v35 = vpop.eup %2162 }
 0x316   : > { %v785_v36 = vmul.f32 %v2163_v35, %v783_v34 }
 0x318   : > { %v786_v37 = vsub.f32 2.0, %v785_v36 }
 0x31a   : > { %v787_v38 = vmul.f32 %v2163_v35, %v786_v37 }
 0x31c   : > { %v788_v40 = vmul.f32 %v2161_v28, %v787_v38 }
 0x31e   : > { %1991 = vmatmul.mubr.msk.f32.vlgmr.msra.gmra.mrb[4].mxu1 %vm698_vm1, %v788_v40 }
 0x31f   : > { %1994 = vmatpush3.xpose.msk.msra.mxu1 %vm698_vm1, %v866_v39  ;;  %1995 = vmatprep.mubr.msk.f32.mxu1 %vm2241_vm0, %v2242_v11 }
 0x320   : > { %1998 = vmatprep.subr.mxu1 %v2242_v11 }
 0x322   : > { %1996 = vmatmul.mubr.msk.f32.vlgmr.msra.gmra.mrb[6].mxu1 %vm698_vm1, %v864_v41 }
 0x323   : > { %2000 = vmatprep.mubr.msk.f32.mxu1 %vm2241_vm0, %v2242_v11 }
 0x3f1   : > { %v858_v42 = vpop.f32.mrb[4].mxu1 }
 0x3f2   : > { %v1992_v43 = vpop.f32.mrb[5].mxu1 }
 0x3f5   : > { %v937_v44 = vpop.f32.mrb[6].mxu1 }
 0x3f6   : > { %v1997_v45 = vpop.f32.mrb[7].mxu1  ;;  %v941_v46 = vsel %vm698_vm1, %v937_v44, -inf }
 0x3f7   : > { %942 = vmax.xlane.f32.xlu0 %v941_v46 }
 0x40d   : > { %956 = vrot.lane.b32.xlu0 %v2577_v32, %s2714_s25  ;;  %s2655_s25 = scalar_lea.hbm %s2708_s11, %s1800_s13 }
 0x411   : > { %1181 = vrot.lane.b32.xlu0 %v2495_v55, %s2244_s29 }
 0x415   : > { %1179 = vrot.lane.b32.xlu0 %v2497_v58, %s2244_s29 }
 0x484   : > { %v943_v47 = vpop.xlane.xlu0 %942 }
 0x485   : > { %v944_v48 = vsub.f32 %v937_v44, %v943_v47 }
 0x487   : > { %v945_v49 = vmul.f32 1.442695, %v944_v48  ;;  %v1798_v48 = vld [vmem:[%s2707_s10] ss:$0 sm:$0xff] }
 0x488   : > { %v957_v50 = vpop.permute.xlu0 %956 }
 0x489   : > { %2164 = vpow2.f32 %v945_v49  ;;  %1999 = vmatpush3.msra.mxu1 %v957_v50 }
 0x48a   : > { %2003 = vmatprep.subr.mxu1 %v2242_v11 }
 0x48c   : > { %v1182_v1 = vpop.permute.xlu0 %1181 }
 0x490   : > { %v1180_v2 = vpop.permute.xlu0 %1179 }
 0x493   : > { %v2165_v51 = vpop.eup %2164 }
 0x494   : > { %v947_v52 = vsel %vm698_vm1, %v2165_v51, 0.0 }
 0x495   : > { %948 = vadd.xlane.f32.xlu1 %v947_v52 }
 0x4a6   : > { %1271 = vrot.lane.b32.xlu1 %v2577_v32, %s2244_s29  ;;  %s401_s29 = sand.u32 1, %s2230_s18  }
 0x4a7   : > { %s1775_s30 = sshll.u32 %s401_s29, 3  ;;  %s1675_s0 = scalar_lea.sflag [#allocation3], %s401_s29 }
 0x522   : > { %v949_v53 = vpop.xlane.xlu1 %948 }
 0x523   : > { %2166 = vrcp.f32 %v949_v53 }
 0x526   : > { %v1272_v4 = vpop.permute.xlu1 %1271 }
 0x52d   : > { %v2167_v54 = vpop.eup %2166 }
 0x52e   : > { %v951_v56 = vmul.f32 %v2167_v54, %v949_v53 }
 0x530   : > { %v952_v57 = vsub.f32 2.0, %v951_v56 }
 0x532   : > { %v953_v59 = vmul.f32 %v2167_v54, %v952_v57 }
 0x534   : > { %v954_v60 = vmul.f32 %v2165_v51, %v953_v59 }
 0x536   : > { %2001 = vmatmul.mubr.msk.f32.vlgmr.msra.gmra.mrb[8].mxu1 %vm698_vm1, %v954_v60 }
 0x537   : > { %2004 = vmatpush3.msra.mxu1 %v1032_v61  ;;  %2005 = vmatprep.mubr.msk.f32.mxu1 %vm2241_vm0, %v2242_v11 }
 0x538   : > { %2008 = vmatprep.subr.mxu1 %v2242_v11 }
 0x609   : > { %v1028_v63 = vpop.f32.mrb[8].mxu1 }
 0x60a   : > { %v2002_v0 = vpop.f32.mrb[9].mxu1  ;;  %2006 = vmatmul.mubr.msk.f32.vlgmr.msra.gmra.mrb[10].mxu1 %vm698_vm1, %v1028_v63 }
 0x60b   : > { %2009 = vmatpush3.msra.mxu1 %v862_v62  ;;  %2010 = vmatprep.mubr.msk.f32.mxu1 %vm2241_vm0, %v2242_v11 }
 0x60c   : > { %2013 = vmatprep.subr.mxu1 %v2242_v11 }
 0x60e   : > { %2011 = vmatmul.mubr.msk.f32.vlgmr.msra.gmra.mrb[12].mxu1 %vm698_vm1, %v858_v42 }
 0x60f   : > { %2015 = vmatprep.mubr.msk.f32.mxu1 %vm2241_vm0, %v2242_v11 }
 0x612   : > { %2014 = vmatpush3.xpose.msk.msra.mxu1 %vm698_vm1, %v1182_v1 }
 0x613   : > { %2018 = vmatprep.subr.mxu1 %v2242_v11 }
 0x615   : > { %2016 = vmatmul.mubr.msk.f32.vlgmr.msra.gmra.mrb[14].mxu1 %vm698_vm1, %v1180_v2 }
 0x616   : > { %2019 = vmatpush3.msra.mxu1 %v1272_v4  ;;  %2020 = vmatprep.mubr.msk.f32.mxu1 %vm2241_vm0, %v2242_v11 }
 0x617   : > { %2028 = vmatprep.subr.mxu1 %v2242_v11 }
 0x6dd   : > { %v1102_v5 = vpop.f32.mrb[10].mxu1 }
 0x6de   : > { %v2007_v6 = vpop.f32.mrb[11].mxu1 }
 0x6e1   : > { %v1175_v7 = vpop.f32.mrb[12].mxu1 }
 0x6e2   : > { %v1176_v8 = vadd.f32 %v1175_v7, %v1102_v5  ;;  %v2012_v9 = vpop.f32.mrb[13].mxu1 }
 0x6e8   : > { %v1253_v10 = vpop.f32.mrb[14].mxu1 }
 0x6e9   : > { %v2017_v12 = vpop.f32.mrb[15].mxu1  ;;  %v1257_v13 = vsel %vm698_vm1, %v1253_v10, -inf }
 0x6ea   : > { %1258 = vmax.xlane.f32.xlu0 %v1257_v13 }
 0x777   : > { %v1259_v14 = vpop.xlane.xlu0 %1258 }
 0x778   : > { %v1260_v15 = vsub.f32 %v1253_v10, %v1259_v14 }
 0x77a   : > { %v1261_v16 = vmul.f32 1.442695, %v1260_v15 }
 0x77c   : > { %2168 = vpow2.f32 %v1261_v16 }
 0x786   : > { %v2169_v17 = vpop.eup %2168 }
 0x787   : > { %v1263_v18 = vsel %vm698_vm1, %v2169_v17, 0.0 }
 0x788   : > { %1264 = vadd.xlane.f32.xlu1 %v1263_v18 }
 0x799   : > { %1424 = vrot.lane.b32.xlu1 %v2495_v55, %s2245_s14 }
 0x79d   : > { %1422 = vrot.lane.b32.xlu1 %v2497_v58, %s2245_s14  ;;  %v1347_v58 = vld [vmem:[%s2706_s9 + $0x10] sm:$0xff] }
 0x79e   : > { %2024 = vmatpush3.msra.mxu0 %v1347_v58 }
 0x79f   : > { %2033 = vmatprep.subr.mxu0 %v2242_v11 }
 0x815   : > { %v1265_v19 = vpop.xlane.xlu1 %1264 }
 0x816   : > { %2170 = vrcp.f32 %v1265_v19 }
 0x819   : > { %v1425_v24 = vpop.permute.xlu1 %1424 }
 0x81d   : > { %v1423_v55 = vpop.permute.xlu1 %1422 }
 0x820   : > { %v2171_v20 = vpop.eup %2170 }
 0x821   : > { %v1267_v21 = vmul.f32 %v2171_v20, %v1265_v19 }
 0x823   : > { %v1268_v22 = vsub.f32 2.0, %v1267_v21 }
 0x825   : > { %v1269_v23 = vmul.f32 %v2171_v20, %v1268_v22 }
 0x827   : > { %v1270_v25 = vmul.f32 %v2169_v17, %v1269_v23 }
 0x829   : > { %2021 = vmatmul.mubr.msk.f32.vlgmr.msra.gmra.mrb[16].mxu1 %vm698_vm1, %v1270_v25 }
 0x82a   : > { %2029 = vmatpush3.xpose.msk.msra.mxu1 %vm698_vm1, %v1425_v24  ;;  %2030 = vmatprep.mubr.msk.f32.mxu1 %vm2241_vm0, %v2242_v11 }
 0x82b   : > { %2038 = vmatprep.subr.mxu1 %v2242_v11 }
 0x82d   : > { %2031 = vmatmul.mubr.msk.f32.vlgmr.msra.gmra.mrb[18].mxu1 %vm698_vm1, %v1423_v55 }
 0x82e   : > { %2040 = vmatprep.mubr.msk.f32.mxu1 %vm2241_vm0, %v2242_v11 }
 0x8fc   : > { %v1343_v26 = vpop.f32.mrb[16].mxu1 }
 0x8fd   : > { %v2022_v27 = vpop.f32.mrb[17].mxu1  ;;  %2026 = vmatmul.mubr.msk.f32.vlgmr.msra.gmra.mrb[4].mxu0 %vm698_vm1, %v1343_v26 }
 0x8fe   : > { %2035 = vmatprep.mubr.msk.f32.mxu0 %vm2241_vm0, %v2242_v11  ;;  %v1590_v11 = vld [vmem:[%s2706_s9 + $0x18] sm:$0xff] }
 0x8ff   : > { %2039 = vmatpush3.msra.mxu1 %v1590_v11 }
 0x900   : > { %v1496_v3 = vpop.f32.mrb[18].mxu1 }
 0x901   : > { %v2032_v28 = vpop.f32.mrb[19].mxu1  ;;  %v1500_v29 = vsel %vm698_vm1, %v1496_v3, -inf }
 0x902   : > { %1501 = vmax.xlane.f32.xlu0 %v1500_v29 }
 0x918   : > { %1514 = vrot.lane.b32.xlu0 %v2577_v32, %s2245_s14  ;;  %s403_s14 = scalar_lea.vmem [#allocation2], %s1775_s30  ;;  %s2180_s30 = sshll.u32 %s2246_s21, 4  ;;  %s2181_s30 = int_to_ptr.vmem [resolvable:$false] %s2180_s30 }
 0x919   : > { %s1688_s24 = sshll.u32 %s403_s14, 4  ;;  %s2182_s16 = scalar_lea.vmem %s2181_s30, 256  ;;  %s2657_s24 = int_to_ptr.vmem [resolvable:$true] %s1688_s24 }
 0x91a   : > { %s2176_s12 = scalar_lea.vmem %s2657_s24, 128  ;;  %p2183_p0 = scmp.lt.s32.totalorder %s2657_s24, %s2181_s30 }
 0x91b   : > { %p2177_p11 = scmp.ne.s32.totalorder %s2657_s24, %s2176_s12  ;;  %p2184_p1 = scmp.lt.s32.totalorder %s2182_s16, %s2176_s12 }
 0x91d   : > { %p2178_p12 = pnand %p2177_p11, %p2345_p5  ;;  %p2185_p2 = por %p2184_p1, %p2183_p0 }
 0x91f   : > { %p2179_p13 = pneg %p2178_p12 }
 0x921   : > { %p2186_p3 = pnand %p2185_p2, %p2179_p13 }
 0x98f   : > { %v1502_v30 = vpop.xlane.xlu0 %1501 }
 0x990   : > { %v1503_v31 = vsub.f32 %v1496_v3, %v1502_v30 }
 0x992   : > { %v1504_v33 = vmul.f32 1.442695, %v1503_v31 }
 0x993   : > { %v1515_v34 = vpop.permute.xlu0 %1514 }
 0x994   : > { %2172 = vpow2.f32 %v1504_v33  ;;  %2034 = vmatpush3.msra.mxu0 %v1515_v34 }
 0x99e   : > { %v2173_v35 = vpop.eup %2172 }
 0x99f   : > { %v1506_v36 = vsel %vm698_vm1, %v2173_v35, 0.0 }
 0x9a0   : > { %1507 = vadd.xlane.f32.xlu1 %v1506_v36 }
 0x9d0   : > { %v1417_v37 = vpop.f32.mrb[4].mxu0 }
 0x9d1   : > { %v1421_v38 = vadd.f32 %v1417_v37, %v1176_v8  ;;  %v2027_v39 = vpop.f32.mrb[5].mxu0 }
 0xa2d   : > { %v1508_v32 = vpop.xlane.xlu1 %1507 }
 0xa2e   : > { %2174 = vrcp.f32 %v1508_v32 }
 0xa38   : > { %v2175_v40 = vpop.eup %2174 }
 0xa39   : > { %v1510_v41 = vmul.f32 %v2175_v40, %v1508_v32 }
 0xa3b   : > { %v1511_v42 = vsub.f32 2.0, %v1510_v41 }
 0xa3d   : > { %v1512_v43 = vmul.f32 %v2175_v40, %v1511_v42 }
 0xa3f   : > { %v1513_v44 = vmul.f32 %v2173_v35, %v1512_v43 }
 0xa41   : > { %2036 = vmatmul.mubr.msk.f32.vlgmr.msra.gmra.mrb[6].mxu0 %vm698_vm1, %v1513_v44 }
 0xb14   : > { %v1586_v45 = vpop.f32.mrb[6].mxu0 }
 0xb15   : > { %v2037_v46 = vpop.f32.mrb[7].mxu0  ;;  %2041 = vmatmul.mubr.msk.f32.vlgmr.msra.gmra.mrb[20].mxu1 %vm698_vm1, %v1586_v45 }
 0xbe8   : > { %v1660_v47 = vpop.f32.mrb[20].mxu1 }
 0xbe9   : > { %v1664_v49 = vadd.f32 %v1660_v47, %v1421_v38  ;;  %v2042_v50 = vpop.f32.mrb[21].mxu1 }
 0xbeb   : > { %v1672_v51 = vadd.f32 %v1798_v48, %v1664_v49 }
 0xbed   : > { %1673 = vst [vmem:[%s403_s14] sm:$0xff] %v1672_v51 }
 0xbee   : > { %2189 = shalt.err (!%p2186_p3)
}
 0xbef   : > { %s2190_s29 = scalar_lea.hbm %s2655_s25, 128  ;;  %s2194_s15 = scalar_lea.hbm %s2708_s11, 256 }
 0xbf0   : > { %p2191_p4 = scmp.ne.s32.totalorder %s2655_s25, %s2190_s29  ;;  %p2195_p9 = scmp.lt.u32.totalorder %s2655_s25, %s2708_s11 }
 0xbf1   : > { %p2196_p10 = scmp.lt.u32.totalorder %s2194_s15, %s2190_s29  ;;  %p2198_p12 = scmp.lt.u32.totalorder %s2190_s29, %s2655_s25 }
 0xbf2   : > { %p2192_p7 = pnand %p2191_p4, %p2345_p5 }
 0xbf3   : > { %p2197_p11 = por %p2196_p10, %p2195_p9 }
 0xbf4   : > { %p2193_p8 = pneg %p2192_p7 }
 0xbf5   : > { %p2199_p13 = por %p2198_p12, %p2197_p11 }
 0xbf7   : > { %p2200_p0 = pnand %p2199_p13, %p2193_p8 }
 0xbf9   : > { %2203 = shalt.err (!%p2200_p0)
}
 0xbfa   : > { %2115 = dma.vmem_to_hbm [thread:$0]  (%p2345_p5), %s2657_s24, 128, %s2655_s25, %s1675_s0  }
 0xbfb PF: > { %p2121_p1 = scmp.ge.s32.totalorder %s2238_s20, 2  ;;  %s1700_s12 = sand.u32 1, %s2226_s17  }
 0xbfc   : > { %s1701_s30 = scalar_lea.sflag [#allocation3], %s1700_s12 }
 0xbfd   : > { %p2118_p2 = pnand %p2121_p1, %p2349_p6 }
 0xbff   : > { %2221 = dma.done.wait (!%p2118_p2), %s1701_s30, 128  }
 0xc00   : > { %2223 = vsyncadd (!%p2118_p2), %s1701_s30, 4294967168  ;;  %p21_p3 = scmp.ge.s32.totalorder %s2332_s23, 4   ;;  %s2715_s17 = smov %s2230_s18 }
 0xc01   : > { %s2716_s18 = smov %s2234_s19  ;;  %s2717_s19 = smov %s2343_s26 }
 0xc02   : > { %s2718_s20 = smov %s2332_s23  ;;  %23 = sbr.rel (!%p21_p3) target bundleno = 5 (0x5), region = 105 }
 0xc09   :  { %1706 = vsyncpa [#allocation3], 1 }
 0xc0a   :  { %1708 = vsyncpa [#allocation3 + $0x1], 1 }

</bundles_post_ra>
